<compile_context>
chip_gen: v5e
topology: v5e:2x2
jax: 0.10.0
libtpu: 0.0.40
codegen_flags: <defaults>
</compile_context>

<pallas_src>
import math

import jax
import jax.numpy as jnp
import numpy as np
from jax.experimental import pallas as pl
from jax.experimental.pallas import tpu as pltpu

# Small synthetic shapes consistent with the module.
B, N, D, OUT_DIM = 2, 8, 32, 32          # batch, num_agents, in_dim, out_dim
NUM_HEADS = 4
HEAD_DIM = D // NUM_HEADS
NUM_GROUPS = 4                           # unused in forward (group_transform)
BN = B * N
SCALE = 1.0 / math.sqrt(HEAD_DIM)

# ---- constant-slab layout: (_SLAB_ROWS, 128) f32, one DMA -------------------
_LANES = 128
_R_WX   = 0                    # rows  0:32  lanes 0:64  = [Wft^T | Wq^T]   (x-side)
                               # rows  0:32  lanes 64:128= [Wk^T  | Wv^T]   (agg-side)
_R_WOUT = D                    # rows 32:64  lanes 0:32  = Wo^T @ Wl^T (folded)
_R_MASK = 2 * D                # rows 64:80  lanes 0:16  = additive block-diag mask
_R_BIAS = 2 * D + BN           # row  80     lanes 0:64 = [bft|bq], 64:128 = [bk|bv]
_R_BOUT = _R_BIAS + 1          # row  81     lanes 0:32 = bo @ Wl^T + bl
_SLAB_ROWS = ((_R_BOUT + 1 + 7) // 8) * 8       # 88 (multiple of 8 sublanes)

# Block-diagonal additive mask, a trace-time numpy constant.
_MASK_NP = np.full((BN, BN), -1e30, dtype=np.float32)
for _b in range(B):
    _MASK_NP[_b * N:(_b + 1) * N, _b * N:(_b + 1) * N] = 0.0


def hgcn_kernel(x_ref, hbd_ref, c_ref, out_ref):
    x = x_ref[...]                                                # (BN, D)

    # Static slices of the packed constant slab (free).
    w_x   = c_ref[0:D, 0:2 * D]                                   # (D, 2D) [Wft^T|Wq^T]
    w_kv  = c_ref[0:D, 2 * D:4 * D]                               # (D, 2D) [Wk^T |Wv^T]
    w_out = c_ref[_R_WOUT:_R_WOUT + D, 0:OUT_DIM]                 # (D, OUT) folded
    mask  = c_ref[_R_MASK:_R_MASK + BN, 0:BN]                     # (BN, BN) 0 / -1e30
    b_x   = c_ref[_R_BIAS:_R_BIAS + 1, 0:2 * D]                   # (1, 2D)
    b_kv  = c_ref[_R_BIAS:_R_BIAS + 1, 2 * D:4 * D]               # (1, 2D)
    b_out = c_ref[_R_BOUT:_R_BOUT + 1, 0:OUT_DIM]                 # (1, OUT)

    # feature_transform + Q projection: ONE wide MXU push.
    xq = jnp.dot(x, w_x, preferred_element_type=jnp.float32) + b_x       # (BN, 2D)
    xt = jnp.maximum(xq[:, 0:D], 0.0)                                    # relu(feat)
    q  = xq[:, D:2 * D]

    # hypergraph aggregation: block-diagonal (BN,BN)@(BN,D), single push.
    agg = jnp.dot(hbd_ref[...], xt, preferred_element_type=jnp.float32)  # (BN, D)

    # fused K|V projection: ONE wide MXU push.
    kv = jnp.dot(agg, w_kv, preferred_element_type=jnp.float32) + b_kv   # (BN, 2D)
    k, v = kv[:, 0:D], kv[:, D:2 * D]

    # Per-head attention (static unroll, 8-lane head slices) with the
    # out_proj+final-linear fold accumulated directly into a (BN, OUT) acc.
    acc = jnp.zeros((BN, OUT_DIM), jnp.float32)
    for h in range(NUM_HEADS):
        sl = slice(h * HEAD_DIM, (h + 1) * HEAD_DIM)
        s = jnp.einsum('qd,kd->qk', q[:, sl], k[:, sl],
                       preferred_element_type=jnp.float32) * SCALE + mask
        s = s - jnp.max(s, axis=-1, keepdims=True)
        p = jnp.exp(s)
        p = p / jnp.sum(p, axis=-1, keepdims=True)   # exact div to hold 1e-4 atol
        o = jnp.dot(p, v[:, sl], preferred_element_type=jnp.float32)        # (BN, HD)
        acc = acc + jnp.dot(o, w_out[sl, :], preferred_element_type=jnp.float32)

    # final (folded) bias + ReLU, single contiguous writeback.
    out_ref[...] = jnp.maximum(acc + b_out, 0.0).astype(out_ref.dtype)


def _pack_constants(p):
    """All weights / biases / mask -> one lane-dense (_SLAB_ROWS, 128) slab."""
    hp = jax.lax.Precision.HIGHEST
    wl_t = p["wl"].T
    w_out = jnp.dot(p["wo"].T, wl_t, precision=hp)          # (D, OUT) folded fold
    b_out = jnp.dot(p["bo"], wl_t, precision=hp) + p["bl"]  # (OUT,)

    slab = jnp.zeros((_SLAB_ROWS, _LANES), jnp.float32)
    slab = slab.at[0:D, 0:D].set(p["wft"].T)
    slab = slab.at[0:D, D:2 * D].set(p["wq"].T)
    slab = slab.at[0:D, 2 * D:3 * D].set(p["wk"].T)
    slab = slab.at[0:D, 3 * D:4 * D].set(p["wv"].T)
    slab = slab.at[_R_WOUT:_R_WOUT + D, 0:OUT_DIM].set(w_out)
    slab = slab.at[_R_MASK:_R_MASK + BN, 0:BN].set(jnp.asarray(_MASK_NP))
    slab = slab.at[_R_BIAS, 0:D].set(p["bft"])
    slab = slab.at[_R_BIAS, D:2 * D].set(p["bq"])
    slab = slab.at[_R_BIAS, 2 * D:3 * D].set(p["bk"])
    slab = slab.at[_R_BIAS, 3 * D:4 * D].set(p["bv"])
    slab = slab.at[_R_BOUT, 0:OUT_DIM].set(b_out)
    return slab


@jax.jit
def hgcn_forward(x, hypergraph, params):
    # NOTE: if params are static across calls, _pack_constants(params) can be
    # hoisted and cached; here it lives inside the same jit so XLA fuses the
    # packing into a handful of small ops instead of eager per-call dispatches.
    slab = _pack_constants(params)

    # Block-diagonal hypergraph: (B,N,N) -> (BN,BN), built in the wrapper.
    hbd = jnp.zeros((BN, BN), jnp.float32)
    for b in range(B):
        hbd = hbd.at[b * N:(b + 1) * N, b * N:(b + 1) * N].set(hypergraph[b])

    flops = (2 * BN * D * (2 * D)            # x @ [Wft|Wq]
             + 2 * BN * BN * D               # hbd @ xt
             + 2 * BN * D * (2 * D)          # agg @ [Wk|Wv]
             + NUM_HEADS * (2 * BN * HEAD_DIM * BN          # q k^T
                            + 2 * BN * BN * HEAD_DIM        # p v
                            + 2 * BN * HEAD_DIM * OUT_DIM))  # o @ W_out_h
    cost = pl.CostEstimate(
        flops=flops,
        transcendentals=NUM_HEADS * BN * BN,
        bytes_accessed=(BN * D + BN * BN + _SLAB_ROWS * _LANES + BN * OUT_DIM) * 4,
    )

    vmem = lambda: pl.BlockSpec(memory_space=pltpu.MemorySpace.VMEM)
    out2d = pl.pallas_call(
        hgcn_kernel,
        out_shape=jax.ShapeDtypeStruct((BN, OUT_DIM), jnp.float32),
        in_specs=[vmem(), vmem(), vmem()],
        out_specs=vmem(),
        cost_estimate=cost,
    )(x.reshape(BN, D), hbd, slab)
    return out2d.reshape(B, N, OUT_DIM)


def reference_forward(x, hypergraph, p):
    """Pure-JAX reference with identical math (for correctness check)."""
    xt = jax.nn.relu(x @ p["wft"].T + p["bft"])
    agg = jnp.einsum("bij,bjd->bid", hypergraph, xt)
    q = x @ p["wq"].T + p["bq"]
    k = agg @ p["wk"].T + p["bk"]
    v = agg @ p["wv"].T + p["bv"]
    qh = q.reshape(B, N, NUM_HEADS, HEAD_DIM)
    kh = k.reshape(B, N, NUM_HEADS, HEAD_DIM)
    vh = v.reshape(B, N, NUM_HEADS, HEAD_DIM)
    s = jnp.einsum("bqhd,bkhd->bhqk", qh, kh) / math.sqrt(HEAD_DIM)
    a = jax.nn.softmax(s, axis=-1)
    o = jnp.einsum("bhqk,bkhd->bqhd", a, vh).reshape(B, N, D)
    o = o @ p["wo"].T + p["bo"]
    return jax.nn.relu(o @ p["wl"].T + p["bl"])


def init_params(key):
    ks = jax.random.split(key, 16)
    s = 0.1
    params = {
        # feature_transform: Linear(in_dim, in_dim)
        "wft": jax.random.normal(ks[0], (D, D), jnp.float32) * s,
        "bft": jax.random.normal(ks[1], (D,), jnp.float32) * s,
        # attention in_proj (q, k, v) — each (embed_dim, embed_dim)
        "wq": jax.random.normal(ks[2], (D, D), jnp.float32) * s,
        "bq": jax.random.normal(ks[3], (D,), jnp.float32) * s,
        "wk": jax.random.normal(ks[4], (D, D), jnp.float32) * s,
        "bk": jax.random.normal(ks[5], (D,), jnp.float32) * s,
        "wv": jax.random.normal(ks[6], (D, D), jnp.float32) * s,
        "bv": jax.random.normal(ks[7], (D,), jnp.float32) * s,
        # attention out_proj: Linear(embed_dim, embed_dim)
        "wo": jax.random.normal(ks[8], (D, D), jnp.float32) * s,
        "bo": jax.random.normal(ks[9], (D,), jnp.float32) * s,
        # final linear: Linear(in_dim, out_dim)
        "wl": jax.random.normal(ks[10], (OUT_DIM, D), jnp.float32) * s,
        "bl": jax.random.normal(ks[11], (OUT_DIM,), jnp.float32) * s,
        # group_transform: Linear(num_groups, in_dim) — unused in forward
        "wg": jax.random.normal(ks[12], (D, NUM_GROUPS), jnp.float32) * s,
        "bg": jax.random.normal(ks[13], (D,), jnp.float32) * s,
    }
    return params


if __name__ == "__main__":
    key = jax.random.PRNGKey(0)
    kx, kh, kp = jax.random.split(key, 3)

    x = jax.random.normal(kx, (B, N, D), jnp.float32)
    # Row-normalized non-negative hypergraph incidence-like matrix (B, N, N).
    hraw = jax.nn.relu(jax.random.normal(kh, (B, N, N), jnp.float32))
    hypergraph = hraw / (jnp.sum(hraw, axis=-1, keepdims=True) + 1e-6)

    params = init_params(kp)

    out = hgcn_forward(x, hypergraph, params)
    out = jax.block_until_ready(out)

    ref = reference_forward(x, hypergraph, params)
    np.testing.assert_allclose(np.asarray(out), np.asarray(ref),
                               rtol=1e-3, atol=1e-4)
    print("KERNEL_OK")
</pallas_src>

<mosaic_0001>
module attributes {stable_mosaic.version = 11 : i64} {
  func.func @hgcn_kernel(%arg0: memref<16x32xf32, #tpu.memory_space<vmem>>, %arg1: memref<16x16xf32, #tpu.memory_space<vmem>>, %arg2: memref<88x128xf32, #tpu.memory_space<vmem>>, %arg3: memref<16x32xf32, #tpu.memory_space<vmem>>) attributes {dimension_semantics = [], scalar_prefetch = 0 : i64, scratch_operands = 0 : i64, tpu.core_type = #tpu.core_type<tc>} {
    %c0 = arith.constant 0 : index
    %c0_0 = arith.constant 0 : index
    %0 = vector.load %arg0[%c0, %c0_0] : memref<16x32xf32, #tpu.memory_space<vmem>>, vector<16x32xf32>
    %c0_1 = arith.constant 0 : index
    %c0_2 = arith.constant 0 : index
    %1 = vector.load %arg2[%c0_1, %c0_2] : memref<88x128xf32, #tpu.memory_space<vmem>>, vector<32x64xf32>
    %c0_3 = arith.constant 0 : index
    %c64 = arith.constant 64 : index
    %2 = vector.load %arg2[%c0_3, %c64] : memref<88x128xf32, #tpu.memory_space<vmem>>, vector<32x64xf32>
    %c32 = arith.constant 32 : index
    %c0_4 = arith.constant 0 : index
    %3 = vector.load %arg2[%c32, %c0_4] : memref<88x128xf32, #tpu.memory_space<vmem>>, vector<32x32xf32>
    %c64_5 = arith.constant 64 : index
    %c0_6 = arith.constant 0 : index
    %4 = vector.load %arg2[%c64_5, %c0_6] : memref<88x128xf32, #tpu.memory_space<vmem>>, vector<16x16xf32>
    %c80 = arith.constant 80 : index
    %c0_7 = arith.constant 0 : index
    %5 = vector.load %arg2[%c80, %c0_7] : memref<88x128xf32, #tpu.memory_space<vmem>>, vector<1x64xf32>
    %c80_8 = arith.constant 80 : index
    %c64_9 = arith.constant 64 : index
    %6 = vector.load %arg2[%c80_8, %c64_9] : memref<88x128xf32, #tpu.memory_space<vmem>>, vector<1x64xf32>
    %c81 = arith.constant 81 : index
    %c0_10 = arith.constant 0 : index
    %7 = vector.load %arg2[%c81, %c0_10] : memref<88x128xf32, #tpu.memory_space<vmem>>, vector<1x32xf32>
    %cst = arith.constant dense<0.000000e+00> : vector<16x64xf32>
    %8 = tpu.matmul %0, %1, %cst {dimension_numbers = #tpu.dot_dimension_numbers<[1], [0], [0], [1], [0, 0, 1, 1], [], []>} : vector<16x32xf32>, vector<32x64xf32>, vector<16x64xf32> -> vector<16x64xf32>
    %9 = vector.broadcast %5 : vector<1x64xf32> to vector<16x64xf32>
    %10 = arith.addf %8, %9 : vector<16x64xf32>
    %11 = vector.extract_strided_slice %10 {offsets = [0, 0], sizes = [16, 32], strides = [1, 1]} : vector<16x64xf32> to vector<16x32xf32>
    %cst_11 = arith.constant 0.000000e+00 : f32
    %12 = vector.broadcast %cst_11 : f32 to vector<16x32xf32>
    %13 = arith.maximumf %11, %12 : vector<16x32xf32>
    %14 = vector.extract_strided_slice %10 {offsets = [0, 32], sizes = [16, 32], strides = [1, 1]} : vector<16x64xf32> to vector<16x32xf32>
    %c0_12 = arith.constant 0 : index
    %c0_13 = arith.constant 0 : index
    %15 = vector.load %arg1[%c0_12, %c0_13] : memref<16x16xf32, #tpu.memory_space<vmem>>, vector<16x16xf32>
    %cst_14 = arith.constant dense<0.000000e+00> : vector<16x32xf32>
    %16 = tpu.matmul %15, %13, %cst_14 {dimension_numbers = #tpu.dot_dimension_numbers<[1], [0], [0], [1], [0, 0, 1, 1], [], []>} : vector<16x16xf32>, vector<16x32xf32>, vector<16x32xf32> -> vector<16x32xf32>
    %cst_15 = arith.constant dense<0.000000e+00> : vector<16x64xf32>
    %17 = tpu.matmul %16, %2, %cst_15 {dimension_numbers = #tpu.dot_dimension_numbers<[1], [0], [0], [1], [0, 0, 1, 1], [], []>} : vector<16x32xf32>, vector<32x64xf32>, vector<16x64xf32> -> vector<16x64xf32>
    %18 = vector.broadcast %6 : vector<1x64xf32> to vector<16x64xf32>
    %19 = arith.addf %17, %18 : vector<16x64xf32>
    %20 = vector.extract_strided_slice %19 {offsets = [0, 0], sizes = [16, 32], strides = [1, 1]} : vector<16x64xf32> to vector<16x32xf32>
    %21 = vector.extract_strided_slice %19 {offsets = [0, 32], sizes = [16, 32], strides = [1, 1]} : vector<16x64xf32> to vector<16x32xf32>
    %cst_16 = arith.constant 0.000000e+00 : f32
    %22 = vector.broadcast %cst_16 : f32 to vector<16x32xf32>
    %23 = vector.extract_strided_slice %14 {offsets = [0, 0], sizes = [16, 8], strides = [1, 1]} : vector<16x32xf32> to vector<16x8xf32>
    %24 = vector.extract_strided_slice %20 {offsets = [0, 0], sizes = [16, 8], strides = [1, 1]} : vector<16x32xf32> to vector<16x8xf32>
    "tpu.trace_start"() <{level = 10 : i32, message = "qd,kd->qk"}> : () -> ()
    %cst_17 = arith.constant dense<0.000000e+00> : vector<16x16xf32>
    %25 = tpu.matmul %23, %24, %cst_17 {dimension_numbers = #tpu.dot_dimension_numbers<[1], [1], [0], [0], [0, 0, 1, 0], [], []>} : vector<16x8xf32>, vector<16x8xf32>, vector<16x16xf32> -> vector<16x16xf32>
    "tpu.trace_stop"() : () -> ()
    %cst_18 = arith.constant 0.353553385 : f32
    %26 = vector.broadcast %cst_18 : f32 to vector<16x16xf32>
    %27 = arith.mulf %25, %26 : vector<16x16xf32>
    %28 = arith.addf %27, %4 : vector<16x16xf32>
    %cst_19 = arith.constant dense<0xFF800000> : vector<16xf32>
    %29 = vector.multi_reduction <maximumf>, %28, %cst_19 [1] : vector<16x16xf32> to vector<16xf32>
    %30 = vector.shape_cast %29 : vector<16xf32> to vector<16x1xf32>
    %31 = vector.broadcast %30 : vector<16x1xf32> to vector<16x16xf32>
    %32 = arith.subf %28, %31 : vector<16x16xf32>
    %33 = math.exp %32 : vector<16x16xf32>
    %cst_20 = arith.constant dense<0.000000e+00> : vector<16xf32>
    %34 = vector.multi_reduction <add>, %33, %cst_20 [1] : vector<16x16xf32> to vector<16xf32>
    %35 = vector.shape_cast %34 : vector<16xf32> to vector<16x1xf32>
    %36 = vector.broadcast %35 : vector<16x1xf32> to vector<16x16xf32>
    %37 = arith.divf %33, %36 : vector<16x16xf32>
    %38 = vector.extract_strided_slice %21 {offsets = [0, 0], sizes = [16, 8], strides = [1, 1]} : vector<16x32xf32> to vector<16x8xf32>
    %cst_21 = arith.constant dense<0.000000e+00> : vector<16x8xf32>
    %39 = tpu.matmul %37, %38, %cst_21 {dimension_numbers = #tpu.dot_dimension_numbers<[1], [0], [0], [1], [0, 0, 1, 1], [], []>} : vector<16x16xf32>, vector<16x8xf32>, vector<16x8xf32> -> vector<16x8xf32>
    %40 = vector.extract_strided_slice %3 {offsets = [0, 0], sizes = [8, 32], strides = [1, 1]} : vector<32x32xf32> to vector<8x32xf32>
    %cst_22 = arith.constant dense<0.000000e+00> : vector<16x32xf32>
    %41 = tpu.matmul %39, %40, %cst_22 {dimension_numbers = #tpu.dot_dimension_numbers<[1], [0], [0], [1], [0, 0, 1, 1], [], []>} : vector<16x8xf32>, vector<8x32xf32>, vector<16x32xf32> -> vector<16x32xf32>
    %42 = arith.addf %22, %41 : vector<16x32xf32>
    %43 = vector.extract_strided_slice %14 {offsets = [0, 8], sizes = [16, 8], strides = [1, 1]} : vector<16x32xf32> to vector<16x8xf32>
    %44 = vector.extract_strided_slice %20 {offsets = [0, 8], sizes = [16, 8], strides = [1, 1]} : vector<16x32xf32> to vector<16x8xf32>
    "tpu.trace_start"() <{level = 10 : i32, message = "qd,kd->qk"}> : () -> ()
    %cst_23 = arith.constant dense<0.000000e+00> : vector<16x16xf32>
    %45 = tpu.matmul %43, %44, %cst_23 {dimension_numbers = #tpu.dot_dimension_numbers<[1], [1], [0], [0], [0, 0, 1, 0], [], []>} : vector<16x8xf32>, vector<16x8xf32>, vector<16x16xf32> -> vector<16x16xf32>
    "tpu.trace_stop"() : () -> ()
    %cst_24 = arith.constant 0.353553385 : f32
    %46 = vector.broadcast %cst_24 : f32 to vector<16x16xf32>
    %47 = arith.mulf %45, %46 : vector<16x16xf32>
    %48 = arith.addf %47, %4 : vector<16x16xf32>
    %cst_25 = arith.constant dense<0xFF800000> : vector<16xf32>
    %49 = vector.multi_reduction <maximumf>, %48, %cst_25 [1] : vector<16x16xf32> to vector<16xf32>
    %50 = vector.shape_cast %49 : vector<16xf32> to vector<16x1xf32>
    %51 = vector.broadcast %50 : vector<16x1xf32> to vector<16x16xf32>
    %52 = arith.subf %48, %51 : vector<16x16xf32>
    %53 = math.exp %52 : vector<16x16xf32>
    %cst_26 = arith.constant dense<0.000000e+00> : vector<16xf32>
    %54 = vector.multi_reduction <add>, %53, %cst_26 [1] : vector<16x16xf32> to vector<16xf32>
    %55 = vector.shape_cast %54 : vector<16xf32> to vector<16x1xf32>
    %56 = vector.broadcast %55 : vector<16x1xf32> to vector<16x16xf32>
    %57 = arith.divf %53, %56 : vector<16x16xf32>
    %58 = vector.extract_strided_slice %21 {offsets = [0, 8], sizes = [16, 8], strides = [1, 1]} : vector<16x32xf32> to vector<16x8xf32>
    %cst_27 = arith.constant dense<0.000000e+00> : vector<16x8xf32>
    %59 = tpu.matmul %57, %58, %cst_27 {dimension_numbers = #tpu.dot_dimension_numbers<[1], [0], [0], [1], [0, 0, 1, 1], [], []>} : vector<16x16xf32>, vector<16x8xf32>, vector<16x8xf32> -> vector<16x8xf32>
    %60 = vector.extract_strided_slice %3 {offsets = [8, 0], sizes = [8, 32], strides = [1, 1]} : vector<32x32xf32> to vector<8x32xf32>
    %cst_28 = arith.constant dense<0.000000e+00> : vector<16x32xf32>
    %61 = tpu.matmul %59, %60, %cst_28 {dimension_numbers = #tpu.dot_dimension_numbers<[1], [0], [0], [1], [0, 0, 1, 1], [], []>} : vector<16x8xf32>, vector<8x32xf32>, vector<16x32xf32> -> vector<16x32xf32>
    %62 = arith.addf %42, %61 : vector<16x32xf32>
    %63 = vector.extract_strided_slice %14 {offsets = [0, 16], sizes = [16, 8], strides = [1, 1]} : vector<16x32xf32> to vector<16x8xf32>
    %64 = vector.extract_strided_slice %20 {offsets = [0, 16], sizes = [16, 8], strides = [1, 1]} : vector<16x32xf32> to vector<16x8xf32>
    "tpu.trace_start"() <{level = 10 : i32, message = "qd,kd->qk"}> : () -> ()
    %cst_29 = arith.constant dense<0.000000e+00> : vector<16x16xf32>
    %65 = tpu.matmul %63, %64, %cst_29 {dimension_numbers = #tpu.dot_dimension_numbers<[1], [1], [0], [0], [0, 0, 1, 0], [], []>} : vector<16x8xf32>, vector<16x8xf32>, vector<16x16xf32> -> vector<16x16xf32>
    "tpu.trace_stop"() : () -> ()
    %cst_30 = arith.constant 0.353553385 : f32
    %66 = vector.broadcast %cst_30 : f32 to vector<16x16xf32>
    %67 = arith.mulf %65, %66 : vector<16x16xf32>
    %68 = arith.addf %67, %4 : vector<16x16xf32>
    %cst_31 = arith.constant dense<0xFF800000> : vector<16xf32>
    %69 = vector.multi_reduction <maximumf>, %68, %cst_31 [1] : vector<16x16xf32> to vector<16xf32>
    %70 = vector.shape_cast %69 : vector<16xf32> to vector<16x1xf32>
    %71 = vector.broadcast %70 : vector<16x1xf32> to vector<16x16xf32>
    %72 = arith.subf %68, %71 : vector<16x16xf32>
    %73 = math.exp %72 : vector<16x16xf32>
    %cst_32 = arith.constant dense<0.000000e+00> : vector<16xf32>
    %74 = vector.multi_reduction <add>, %73, %cst_32 [1] : vector<16x16xf32> to vector<16xf32>
    %75 = vector.shape_cast %74 : vector<16xf32> to vector<16x1xf32>
    %76 = vector.broadcast %75 : vector<16x1xf32> to vector<16x16xf32>
    %77 = arith.divf %73, %76 : vector<16x16xf32>
    %78 = vector.extract_strided_slice %21 {offsets = [0, 16], sizes = [16, 8], strides = [1, 1]} : vector<16x32xf32> to vector<16x8xf32>
    %cst_33 = arith.constant dense<0.000000e+00> : vector<16x8xf32>
    %79 = tpu.matmul %77, %78, %cst_33 {dimension_numbers = #tpu.dot_dimension_numbers<[1], [0], [0], [1], [0, 0, 1, 1], [], []>} : vector<16x16xf32>, vector<16x8xf32>, vector<16x8xf32> -> vector<16x8xf32>
    %80 = vector.extract_strided_slice %3 {offsets = [16, 0], sizes = [8, 32], strides = [1, 1]} : vector<32x32xf32> to vector<8x32xf32>
    %cst_34 = arith.constant dense<0.000000e+00> : vector<16x32xf32>
    %81 = tpu.matmul %79, %80, %cst_34 {dimension_numbers = #tpu.dot_dimension_numbers<[1], [0], [0], [1], [0, 0, 1, 1], [], []>} : vector<16x8xf32>, vector<8x32xf32>, vector<16x32xf32> -> vector<16x32xf32>
    %82 = arith.addf %62, %81 : vector<16x32xf32>
    %83 = vector.extract_strided_slice %14 {offsets = [0, 24], sizes = [16, 8], strides = [1, 1]} : vector<16x32xf32> to vector<16x8xf32>
    %84 = vector.extract_strided_slice %20 {offsets = [0, 24], sizes = [16, 8], strides = [1, 1]} : vector<16x32xf32> to vector<16x8xf32>
    "tpu.trace_start"() <{level = 10 : i32, message = "qd,kd->qk"}> : () -> ()
    %cst_35 = arith.constant dense<0.000000e+00> : vector<16x16xf32>
    %85 = tpu.matmul %83, %84, %cst_35 {dimension_numbers = #tpu.dot_dimension_numbers<[1], [1], [0], [0], [0, 0, 1, 0], [], []>} : vector<16x8xf32>, vector<16x8xf32>, vector<16x16xf32> -> vector<16x16xf32>
    "tpu.trace_stop"() : () -> ()
    %cst_36 = arith.constant 0.353553385 : f32
    %86 = vector.broadcast %cst_36 : f32 to vector<16x16xf32>
    %87 = arith.mulf %85, %86 : vector<16x16xf32>
    %88 = arith.addf %87, %4 : vector<16x16xf32>
    %cst_37 = arith.constant dense<0xFF800000> : vector<16xf32>
    %89 = vector.multi_reduction <maximumf>, %88, %cst_37 [1] : vector<16x16xf32> to vector<16xf32>
    %90 = vector.shape_cast %89 : vector<16xf32> to vector<16x1xf32>
    %91 = vector.broadcast %90 : vector<16x1xf32> to vector<16x16xf32>
    %92 = arith.subf %88, %91 : vector<16x16xf32>
    %93 = math.exp %92 : vector<16x16xf32>
    %cst_38 = arith.constant dense<0.000000e+00> : vector<16xf32>
    %94 = vector.multi_reduction <add>, %93, %cst_38 [1] : vector<16x16xf32> to vector<16xf32>
    %95 = vector.shape_cast %94 : vector<16xf32> to vector<16x1xf32>
    %96 = vector.broadcast %95 : vector<16x1xf32> to vector<16x16xf32>
    %97 = arith.divf %93, %96 : vector<16x16xf32>
    %98 = vector.extract_strided_slice %21 {offsets = [0, 24], sizes = [16, 8], strides = [1, 1]} : vector<16x32xf32> to vector<16x8xf32>
    %cst_39 = arith.constant dense<0.000000e+00> : vector<16x8xf32>
    %99 = tpu.matmul %97, %98, %cst_39 {dimension_numbers = #tpu.dot_dimension_numbers<[1], [0], [0], [1], [0, 0, 1, 1], [], []>} : vector<16x16xf32>, vector<16x8xf32>, vector<16x8xf32> -> vector<16x8xf32>
    %100 = vector.extract_strided_slice %3 {offsets = [24, 0], sizes = [8, 32], strides = [1, 1]} : vector<32x32xf32> to vector<8x32xf32>
    %cst_40 = arith.constant dense<0.000000e+00> : vector<16x32xf32>
    %101 = tpu.matmul %99, %100, %cst_40 {dimension_numbers = #tpu.dot_dimension_numbers<[1], [0], [0], [1], [0, 0, 1, 1], [], []>} : vector<16x8xf32>, vector<8x32xf32>, vector<16x32xf32> -> vector<16x32xf32>
    %102 = arith.addf %82, %101 : vector<16x32xf32>
    %103 = vector.broadcast %7 : vector<1x32xf32> to vector<16x32xf32>
    %104 = arith.addf %102, %103 : vector<16x32xf32>
    %cst_41 = arith.constant 0.000000e+00 : f32
    %105 = vector.broadcast %cst_41 : f32 to vector<16x32xf32>
    %106 = arith.maximumf %104, %105 : vector<16x32xf32>
    %c0_42 = arith.constant 0 : index
    %c0_43 = arith.constant 0 : index
    %107 = vector.load %arg3[%c0_42, %c0_43] : memref<16x32xf32, #tpu.memory_space<vmem>>, vector<16x32xf32>
    tpu.vector_store %arg3[%c0_42, %c0_43], %106 {strides = array<i32>} : memref<16x32xf32, #tpu.memory_space<vmem>>, vector<16x32xf32>,
    return
  }
}

</mosaic_0001>

<bundles_post_ra>
// kernel: hgcn_forward.1
= control target key start
LH: loop header
LB: loop body
LE: loop exit
PB: predicated region body
PF: predicated region fallthrough
CT: control target
= control target key end

     0   :  { %s1155_s0 = inlined_call_operand.vmem [shape: f32[16,32], index: 0, kind: input, shape index: {}]   ;;  %s1156_s1 = inlined_call_operand.vmem [shape: f32[16,16], index: 1, kind: input, shape index: {}]   ;;  %s1157_s2 = inlined_call_operand.vmem [shape: f32[88,128], index: 2, kind: input, shape index: {}]   ;;  %s1158_s3 = inlined_call_operand.hbm [shape: f32[16,32], index: 3, kind: output, shape index: {}]  }
   0x1   :  { %v20_v0 = vld [vmem:[%s1157_s2 + $0x18] sm:$0xff]  ;;  %v19_v1 = vld [vmem:[%s1157_s2 + $0x10] sm:$0xff]  ;;  %v18_v2 = vld [vmem:[%s1157_s2 + $0x8] sm:$0xff] }
   0x2   :  { %831 = vmatpush.msra.mxu3 %v20_v0  ;;  %49 = vmatpush.msra.mxu0 %v20_v0  ;;  %v876_v3 = vld [vmem:[%s1157_s2 + $0x50] ss:$0 sm:$0xff] }
   0x4   :  { %832 = vmatpush.msra.mxu3 %v19_v1  ;;  %50 = vmatpush.msra.mxu0 %v19_v1 }
   0x5   :  { %8 = vsyncpa [#allocation3], 0  ;;  %v17_v4 = vld [vmem:[%s1157_s2] sm:$0xff]  ;;  %s936_s22 = smov 64   ;;  %v16_v5 = vld [vmem:[%s1155_s0 + $0x8] sm:$0xff]  ;;  %vm30_vm0 = vcmask 261120   ;;  %v846_v7 = vpack.i.bf16 %v19_v1, %v20_v0 }
   0x6   :  { %111 = vrot.lane.b32.xlu1 %v876_v3, %s936_s22  ;;  %833 = vmatpush.msra.mxu3 %v18_v2  ;;  %v15_v6 = vld [vmem:[%s1155_s0] sm:$0xff]  ;;  %v851_v8 = vpack.i.bf16 %v17_v4, %v18_v2  ;;  %s937_s27 = smov 96   ;;  %vm64_vm1 = vcmask 130048   ;;  %v63_v16 = vld [vmem:[%s1156_s1 + $0x8] sm:$0xff]  ;;  %vm149_vm2 = vcmask 64512   ;;  %s938_s7 = smov 120  }
   0x7   :  { %51 = vmatpush.msra.mxu0 %v18_v2  ;;  %847 = vrot.lane.b32.xlu0 %v846_v7, %s936_s22  ;;  %v62_v15 = vld [vmem:[%s1156_s1] sm:$0xff]  ;;  %v1024_v38 = vld [vmem:[%s1157_s2 + $0x48] sm:$0xff]  ;;  %s939_s8 = smov 88   ;;  %s940_s9 = smov 112  }
   0x8   :  { %834 = vmatpush.msra.mxu3 %v17_v4  ;;  %v1017_v33 = vld [vmem:[%s1157_s2 + $0x40] sm:$0xff]  ;;  %s941_s10 = smov 104   ;;  %s942_s11 = smov 72  }
   0x9   :  { %52 = vmatpush.msra.mxu0 %v17_v4  ;;  %794 = vmatmul.msk.f32.vlgmr.msra.gmra.mxu3 %vm30_vm0, %v16_v5  ;;  %s943_s12 = smov 80   ;;  %s944_s23 = smov [#allocation2]  }
   0xa   :  { %793 = vmatmul.msk.f32.vlgmr.msra.gmra.mxu0 %vm30_vm0, %v15_v6  ;;  %s779_s24 = sshll.u32 %s944_s23, 4  ;;  %s946_s0 = smov 8   ;;  %s780_s24 = int_to_ptr.vmem [resolvable:$true] %s779_s24 }
   0xf   :  { %852 = vrot.lane.b32.xlu0 %v851_v8, %s936_s22 }
  0x78   :  { %v112_v26 = vpop.permute.xlu1 %111 }
  0x79   :  { %v848_v17 = vpop.permute.xlu0 %847 }
  0x7a   :  { %v849_v18 = vunpack.i.l.bf16 %v848_v17  ;;  %v850_v19 = vunpack.i.h.bf16 %v848_v17 }
  0x7c   :  { %132 = vmatpush.msra.mxu2 %v849_v18 }
  0x7e   :  { %133 = vmatpush.msra.mxu2 %v850_v19 }
  0x81   :  { %v853_v20 = vpop.permute.xlu0 %852 }
  0x82   :  { %v854_v21 = vunpack.i.l.bf16 %v853_v20  ;;  %v855_v22 = vunpack.i.h.bf16 %v853_v20 }
  0x84   :  { %134 = vmatpush.msra.mxu2 %v854_v21 }
  0x86   :  { %135 = vmatpush.msra.mxu2 %v855_v22 }
  0x87   :  { %v54_v9 = vpop.f32.mrf.mxu0 }
  0x88   :  { %v990_v10 = vadd.f32 %v876_v3, %v54_v9 }
  0x8a   :  { %145 = vrot.lane.b32.xlu1 %v990_v10, %s937_s27  ;;  %v60_v14 = vmax.f32 %v990_v10, 0.0 }
  0x8c   :  { %v57_v11 = vpop.f32.mrf.mxu3 }
  0x8d   :  { %v994_v12 = vadd.f32 %v876_v3, %v57_v11 }
  0x8f   :  { %147 = vrot.lane.b32.xlu2 %v994_v12, %s937_s27  ;;  %v61_v13 = vmax.f32 %v994_v12, 0.0 }
  0x91   :  { %85 = vmatpush.msra.mxu1 %v61_v13 }
  0x93   :  { %86 = vmatpush.msra.mxu1 %v60_v14 }
  0x94   :  { %795 = vmatmul.msk.f32.vlgmr.msra.gmra.mxu1 %vm64_vm1, %v62_v15 }
  0x9c   :  { %796 = vmatmul.msk.f32.gmra.mxu1 %vm64_vm1, %v63_v16 }
  0xe9   :  { %v148_v31 = vpop.permute.xlu2 %147 }
  0xfc   :  { %v146_v30 = vpop.permute.xlu1 %145 }
 0x111   :  { %v88_v23 = vpop.f32.mrf.mxu1 }
 0x112   :  { %797 = vmatmul.msk.f32.vlgmr.msra.gmra.mxu2 %vm30_vm0, %v88_v23 }
 0x119   :  { %v91_v24 = vpop.f32.mrf.mxu1 }
 0x11a   :  { %798 = vmatmul.msk.f32.gmra.mxu2 %vm30_vm0, %v91_v24 }
 0x195   :  { %v137_v25 = vpop.f32.mrf.mxu2 }
 0x196   :  { %v138_v29 = vadd.f32 %v137_v25, %v112_v26 }
 0x19d   :  { %v140_v27 = vpop.f32.mrf.mxu2 }
 0x19e   :  { %v141_v28 = vadd.f32 %v140_v27, %v112_v26 }
 0x1a0   :  { %799 = vmatpush.xpose.msk.msrb.mxu3 %vm149_vm2, %v141_v28  ;;  %v1035_v53 = vpack.i.bf16 %v138_v29, %v141_v28 }
 0x1a4   :  { %800 = vmatpush.xpose.msk.msrb.mxu3 %vm149_vm2, %v138_v29 }
 0x1a7   :  { %801 = vmatmul.msk.f32.vlgmr.msrb.gmra.mxu3 %vm149_vm2, %v146_v30 }
 0x1af   :  { %802 = vmatmul.msk.f32.gmra.mxu3 %vm149_vm2, %v148_v31 }
 0x22a   :  { %v177_v32 = vpop.f32.mrf.mxu3 }
 0x22b   :  { %v183_v34 = vmul.f32 0.35355338, %v177_v32 }
 0x22d   :  { %v185_v35 = vadd.f32 %v183_v34, %v1017_v33 }
 0x22f   :  { %v187_v36 = vsel %vm64_vm1, %v185_v35, -inf }
 0x230   :  { %188 = vmax.xlane.f32.xlu2 %v187_v36 }
 0x232   :  { %v180_v37 = vpop.f32.mrf.mxu3 }
 0x233   :  { %v184_v39 = vmul.f32 0.35355338, %v180_v37 }
 0x235   :  { %v186_v40 = vadd.f32 %v184_v39, %v1024_v38 }
 0x237   :  { %v190_v41 = vsel %vm64_vm1, %v186_v40, -inf }
 0x238   :  { %191 = vmax.xlane.f32.xlu0 %v190_v41 }
 0x24c   :  { %276 = vrot.lane.b32.xlu0 %v141_v28, %s938_s7 }
 0x254   :  { %270 = vrot.lane.b32.xlu0 %v990_v10, %s939_s8 }
 0x25c   :  { %458 = vrot.lane.b32.xlu0 %v138_v29, %s940_s9 }
 0x264   :  { %615 = vrot.lane.b32.xlu0 %v138_v29, %s941_s10 }
 0x26c   :  { %613 = vrot.lane.b32.xlu0 %v994_v12, %s942_s11 }
 0x2a3   :  { %v189_v42 = vpop.xlane.xlu2 %188 }
 0x2a4   :  { %v193_v43 = vsub.f32 %v185_v35, %v189_v42 }
 0x2a6   :  { %v195_v44 = vmul.f32 1.442695, %v193_v43 }
 0x2a8   :  { %878 = vpow2.f32 %v195_v44 }
 0x2ab   :  { %v192_v45 = vpop.xlane.xlu0 %191 }
 0x2ac   :  { %v194_v46 = vsub.f32 %v186_v40, %v192_v45 }
 0x2ae   :  { %v879_v47 = vpop.eup %878  ;;  %v197_v48 = vmul.f32 1.442695, %v194_v46 }
 0x2af   :  { %v199_v49 = vsel %vm64_vm1, %v879_v47, 0.0 }
 0x2b0   :  { %880 = vpow2.f32 %v197_v48  ;;  %200 = vadd.xlane.f32.xlu1 %v199_v49 }
 0x2b6   :  { %v881_v50 = vpop.eup %880 }
 0x2b7   :  { %v202_v51 = vsel %vm64_vm1, %v881_v50, 0.0 }
 0x2b8   :  { %203 = vadd.xlane.f32.xlu2 %v202_v51 }
 0x2be   :  { %v277_v52 = vpop.permute.xlu0 %276 }
 0x2bf   :  { %805 = vmatpush.xpose.msk.msrb.mxu0 %vm149_vm2, %v277_v52 }
 0x2c6   :  { %v271_v15 = vpop.permute.xlu0 %270 }
 0x2c9   :  { %274 = vrot.lane.b32.xlu1 %v138_v29, %s938_s7 }
 0x2ce   :  { %v459_v22 = vpop.permute.xlu0 %458 }
 0x2d0   :  { %857 = vrot.lane.b32.xlu2 %v1035_v53, %s937_s27  ;;  %s781_s27 = sshll.u32 %s1158_s3, 4  ;;  %s782_s27 = int_to_ptr.hbm [resolvable:$true] %s781_s27 }
 0x2d1   :  { %460 = vrot.lane.b32.xlu1 %v141_v28, %s940_s9 }
 0x2d6   :  { %v616_v25 = vpop.permute.xlu0 %615 }
 0x2d8   :  { %272 = vrot.lane.b32.xlu2 %v994_v12, %s939_s8 }
 0x2d9   :  { %617 = vrot.lane.b32.xlu1 %v141_v28, %s941_s10 }
 0x2de   :  { %v614_v42 = vpop.permute.xlu0 %613 }
 0x2e0   :  { %454 = vrot.lane.b32.xlu2 %v990_v10, %s943_s12 }
 0x2e1   :  { %611 = vrot.lane.b32.xlu1 %v990_v10, %s942_s11 }
 0x2e8   :  { %456 = vrot.lane.b32.xlu2 %v994_v12, %s943_s12  ;;  %v21_v12 = vld [vmem:[%s1157_s2 + $0x20] sm:$0xff] }
 0x323   :  { %v201_v54 = vpop.xlane.xlu1 %200 }
 0x324   :  { %882 = vrcp.f32 %v201_v54  ;;  %v216_v59 = vand.u32 2147483648, %v201_v54  ;;  %v214_v61 = vand.u32 2147483647, %v201_v54  ;;  %vm210_vm4 = vweird.f32 %v201_v54 }
 0x326   :  { %v217_v0 = vor.u32 1.1754944e-38, %v216_v59  ;;  %vm215_vm6 = vcmp.eq.f32.partialorder %v214_v61, 8.507059e+37 }
 0x32a   :  { %v883_v55 = vpop.eup %882 }
 0x32b   :  { %v206_v56 = vmul.f32 %v883_v55, %v201_v54  ;;  %v204_v57 = vpop.xlane.xlu2 %203  ;;  %vm211_vm3 = vweird.f32 %v883_v55 }
 0x32c   :  { %884 = vrcp.f32 %v204_v57  ;;  %vm212_vm5 = vmor %vm210_vm4, %vm211_vm3  ;;  %v231_v7 = vand.u32 2147483648, %v204_v57  ;;  %v229_v11 = vand.u32 2147483647, %v204_v57  ;;  %vm225_vm8 = vweird.f32 %v204_v57 }
 0x32d   :  { %v207_v58 = vsub.f32 1.0, %v206_v56 }
 0x32e   :  { %v232_v14 = vor.u32 1.1754944e-38, %v231_v7  ;;  %vm230_vm10 = vcmp.eq.f32.partialorder %v229_v11, 8.507059e+37 }
 0x32f   :  { %v208_v60 = vmul.f32 %v883_v55, %v207_v58 }
 0x331   :  { %v209_v62 = vadd.f32 %v883_v55, %v208_v60 }
 0x332   :  { %v885_v63 = vpop.eup %884 }
 0x333   :  { %v221_v1 = vmul.f32 %v885_v63, %v204_v57  ;;  %v858_v2 = vpop.permute.xlu2 %857  ;;  %v213_v3 = vsel %vm212_vm5, %v883_v55, %v209_v62  ;;  %vm226_vm7 = vweird.f32 %v885_v63 }
 0x334   :  { %v859_v4 = vunpack.i.l.bf16 %v858_v2  ;;  %v218_v5 = vsel %vm215_vm6, %v217_v0, %v213_v3  ;;  %v860_v8 = vunpack.i.h.bf16 %v858_v2  ;;  %vm227_vm9 = vmor %vm225_vm8, %vm226_vm7 }
 0x335   :  { %v222_v6 = vsub.f32 1.0, %v221_v1  ;;  %v219_v10 = vmul.f32 %v879_v47, %v218_v5 }
 0x336   :  { %261 = vmatpush.msrb.mxu1 %v859_v4 }
 0x337   :  { %v223_v9 = vmul.f32 %v885_v63, %v222_v6 }
 0x338   :  { %262 = vmatpush.msrb.mxu1 %v860_v8 }
 0x339   :  { %803 = vmatmul.msk.f32.vlgmr.msrb.gmra.mxu1 %vm64_vm1, %v219_v10  ;;  %v224_v13 = vadd.f32 %v885_v63, %v223_v9 }
 0x33a   :  { %446 = vmatpush.msra.mxu1 %v21_v12 }
 0x33b   :  { %v275_v16 = vpop.permute.xlu1 %274  ;;  %v228_v17 = vsel %vm227_vm9, %v885_v63, %v224_v13  ;;  %v273_v20 = vpop.permute.xlu2 %272 }
 0x33c   :  { %806 = vmatpush.xpose.msk.msrb.mxu0 %vm149_vm2, %v275_v16  ;;  %v233_v18 = vsel %vm230_vm10, %v232_v14, %v228_v17 }
 0x33d   :  { %v234_v19 = vmul.f32 %v881_v50, %v233_v18 }
 0x33f   :  { %807 = vmatmul.msk.f32.vlgmr.msrb.gmra.mxu0 %vm149_vm2, %v271_v15 }
 0x341   :  { %804 = vmatmul.msk.f32.gmra.mxu1 %vm64_vm1, %v234_v19 }
 0x343   :  { %v461_v21 = vpop.permute.xlu1 %460  ;;  %v455_v24 = vpop.permute.xlu2 %454 }
 0x344   :  { %815 = vmatpush.xpose.msk.msra.mxu0 %vm149_vm2, %v461_v21 }
 0x347   :  { %808 = vmatmul.msk.f32.gmra.mxu0 %vm149_vm2, %v273_v20 }
 0x348   :  { %816 = vmatpush.xpose.msk.msra.mxu0 %vm149_vm2, %v459_v22 }
 0x34b   :  { %v618_v23 = vpop.permute.xlu1 %617  ;;  %v457_v26 = vpop.permute.xlu2 %456 }
 0x34c   :  { %823 = vmatpush.xpose.msk.msrb.mxu1 %vm149_vm2, %v618_v23 }
 0x34f   :  { %817 = vmatmul.msk.f32.vlgmr.msra.gmra.mxu0 %vm149_vm2, %v455_v24 }
 0x350   :  { %824 = vmatpush.xpose.msk.msrb.mxu1 %vm149_vm2, %v616_v25 }
 0x353   :  { %v612_v36 = vpop.permute.xlu1 %611 }
 0x357   :  { %818 = vmatmul.msk.f32.gmra.mxu0 %vm149_vm2, %v457_v26 }
 0x3b6   :  { %v264_v27 = vpop.f32.mrf.mxu1 }
 0x3b7   :  { %813 = vmatmul.msk.f32.vlgmr.msra.gmra.mxu1 %vm149_vm2, %v264_v27 }
 0x3bc   :  { %v303_v28 = vpop.f32.mrf.mxu0 }
 0x3bd   :  { %v309_v29 = vmul.f32 0.35355338, %v303_v28 }
 0x3be   :  { %v267_v30 = vpop.f32.mrf.mxu1 }
 0x3bf   :  { %814 = vmatmul.msk.f32.gmra.mxu1 %vm149_vm2, %v267_v30  ;;  %v311_v31 = vadd.f32 %v309_v29, %v1017_v33 }
 0x3c1   :  { %v313_v32 = vsel %vm64_vm1, %v311_v31, -inf }
 0x3c2   :  { %314 = vmax.xlane.f32.xlu2 %v313_v32 }
 0x3c4   :  { %v306_v34 = vpop.f32.mrf.mxu0 }
 0x3c5   :  { %v310_v35 = vmul.f32 0.35355338, %v306_v34 }
 0x3c7   :  { %825 = vmatmul.msk.f32.vlgmr.msrb.gmra.mxu1 %vm149_vm2, %v612_v36  ;;  %v312_v37 = vadd.f32 %v310_v35, %v1024_v38 }
 0x3c9   :  { %v316_v39 = vsel %vm64_vm1, %v312_v37, -inf }
 0x3ca   :  { %317 = vmax.xlane.f32.xlu1 %v316_v39 }
 0x3cc   :  { %v487_v40 = vpop.f32.mrf.mxu0 }
 0x3cd   :  { %v493_v41 = vmul.f32 0.35355338, %v487_v40 }
 0x3cf   :  { %826 = vmatmul.msk.f32.gmra.mxu1 %vm149_vm2, %v614_v42  ;;  %v495_v43 = vadd.f32 %v493_v41, %v1017_v33 }
 0x3d1   :  { %v497_v44 = vsel %vm64_vm1, %v495_v43, -inf }
 0x3d2   :  { %498 = vmax.xlane.f32.xlu0 %v497_v44 }
 0x3d4   :  { %v490_v45 = vpop.f32.mrf.mxu0 }
 0x3d5   :  { %v494_v46 = vmul.f32 0.35355338, %v490_v45 }
 0x3d7   :  { %v496_v47 = vadd.f32 %v494_v46, %v1024_v38 }
 0x3d9   :  { %v500_v48 = vsel %vm64_vm1, %v496_v47, -inf }
 0x3da   :  { %501 = vmax.xlane.f32.xlu2 %v500_v48 }
 0x434   :  { %v1073_v49 = vpop.f32.mrf.mxu1 }
 0x435   :  { %v315_v50 = vpop.xlane.xlu2 %314 }
 0x436   :  { %v319_v51 = vsub.f32 %v311_v31, %v315_v50 }
 0x438   :  { %v321_v52 = vmul.f32 1.442695, %v319_v51 }
 0x43a   :  { %886 = vpow2.f32 %v321_v52 }
 0x43c   :  { %v1075_v54 = vpop.f32.mrf.mxu1 }
 0x43d   :  { %v318_v55 = vpop.xlane.xlu1 %317 }
 0x43e   :  { %v320_v57 = vsub.f32 %v312_v37, %v318_v55 }
 0x440   :  { %v1077_v56 = vpop.eup %886  ;;  %v323_v59 = vmul.f32 1.442695, %v320_v57 }
 0x441   :  { %v325_v58 = vsel %vm64_vm1, %v1077_v56, 0.0 }
 0x442   :  { %326 = vadd.xlane.f32.xlu2 %v325_v58  ;;  %888 = vpow2.f32 %v323_v59 }
 0x444   :  { %v644_v60 = vpop.f32.mrf.mxu1 }
 0x445   :  { %v650_v61 = vmul.f32 0.35355338, %v644_v60  ;;  %v499_v62 = vpop.xlane.xlu0 %498 }
 0x446   :  { %v503_v0 = vsub.f32 %v495_v43, %v499_v62 }
 0x447   :  { %v652_v63 = vadd.f32 %v650_v61, %v1017_v33 }
 0x448   :  { %v505_v3 = vmul.f32 1.442695, %v503_v0  ;;  %v1083_v6 = vpop.eup %888 }
 0x449   :  { %v654_v1 = vsel %vm64_vm1, %v652_v63, -inf  ;;  %v328_v10 = vsel %vm64_vm1, %v1083_v6, 0.0 }
 0x44a   :  { %655 = vmax.xlane.f32.xlu1 %v654_v1  ;;  %890 = vpow2.f32 %v505_v3 }
 0x44c   :  { %v647_v2 = vpop.f32.mrf.mxu1 }
 0x44d   :  { %v651_v4 = vmul.f32 0.35355338, %v647_v2  ;;  %v502_v5 = vpop.xlane.xlu2 %501 }
 0x44e   :  { %v504_v7 = vsub.f32 %v496_v47, %v502_v5 }
 0x44f   :  { %v653_v8 = vadd.f32 %v651_v4, %v1024_v38 }
 0x450   :  { %v507_v9 = vmul.f32 1.442695, %v504_v7  ;;  %v1089_v11 = vpop.eup %890 }
 0x451   :  { %v657_v33 = vsel %vm64_vm1, %v653_v8, -inf  ;;  %v509_v38 = vsel %vm64_vm1, %v1089_v11, 0.0 }
 0x452   :  { %892 = vpow2.f32 %v507_v9  ;;  %329 = vadd.xlane.f32.xlu1 %v328_v10  ;;  %658 = vmax.xlane.f32.xlu0 %v657_v33 }
 0x458   :  { %v1091_v12 = vpop.eup %892 }
 0x459   :  { %v512_v13 = vsel %vm64_vm1, %v1091_v12, 0.0 }
 0x45a   :  { %862 = vrot.lane.b32.xlu2 %v1035_v53, %s939_s8  ;;  %513 = vadd.xlane.f32.xlu1 %v512_v13 }
 0x45b   :  { %510 = vadd.xlane.f32.xlu0 %v509_v38 }
 0x4b5   :  { %v327_v14 = vpop.xlane.xlu2 %326 }
 0x4b6   :  { %894 = vrcp.f32 %v327_v14  ;;  %v342_v25 = vand.u32 2147483648, %v327_v14  ;;  %v340_v26 = vand.u32 2147483647, %v327_v14  ;;  %vm336_vm12 = vweird.f32 %v327_v14 }
 0x4b8   :  { %v343_v28 = vor.u32 1.1754944e-38, %v342_v25  ;;  %vm341_vm14 = vcmp.eq.f32.partialorder %v340_v26, 8.507059e+37 }
 0x4bc   :  { %v895_v15 = vpop.eup %894 }
 0x4bd   :  { %v332_v16 = vmul.f32 %v895_v15, %v327_v14  ;;  %v863_v17 = vpop.permute.xlu2 %862  ;;  %v656_v18 = vpop.xlane.xlu1 %655  ;;  %vm337_vm11 = vweird.f32 %v895_v15 }
 0x4be   :  { %v864_v19 = vunpack.i.l.bf16 %v863_v17  ;;  %v660_v20 = vsub.f32 %v652_v63, %v656_v18  ;;  %v865_v22 = vunpack.i.h.bf16 %v863_v17  ;;  %vm338_vm13 = vmor %vm336_vm12, %vm337_vm11 }
 0x4bf   :  { %v333_v21 = vsub.f32 1.0, %v332_v16 }
 0x4c0   :  { %v662_v23 = vmul.f32 1.442695, %v660_v20  ;;  %387 = vmatpush.msrb.mxu2 %v864_v19 }
 0x4c1   :  { %v334_v24 = vmul.f32 %v895_v15, %v333_v21 }
 0x4c2   :  { %896 = vpow2.f32 %v662_v23  ;;  %388 = vmatpush.msrb.mxu2 %v865_v22 }
 0x4c3   :  { %v335_v27 = vadd.f32 %v895_v15, %v334_v24 }
 0x4c5   :  { %v330_v29 = vpop.xlane.xlu1 %329  ;;  %v659_v30 = vpop.xlane.xlu0 %658  ;;  %v339_v31 = vsel %vm338_vm13, %v895_v15, %v335_v27 }
 0x4c6   :  { %898 = vrcp.f32 %v330_v29  ;;  %v661_v32 = vsub.f32 %v653_v8, %v659_v30  ;;  %v344_v34 = vsel %vm341_vm14, %v343_v28, %v339_v31  ;;  %v357_v44 = vand.u32 2147483648, %v330_v29 }
 0x4c7   :  { %v345_v37 = vmul.f32 %v1077_v56, %v344_v34  ;;  %v355_v47 = vand.u32 2147483647, %v330_v29  ;;  %vm351_vm3 = vweird.f32 %v330_v29  ;;  %v22_v56 = vld [vmem:[%s1157_s2 + $0x28] sm:$0xff] }
 0x4c8   :  { %v1099_v35 = vpop.eup %896  ;;  %v664_v36 = vmul.f32 1.442695, %v661_v32  ;;  %v358_v50 = vor.u32 1.1754944e-38, %v357_v44  ;;  %417 = vmatpush.msra.mxu3 %v22_v56 }
 0x4c9   :  { %v666_v39 = vsel %vm64_vm1, %v1099_v35, 0.0  ;;  %809 = vmatmul.msk.f32.vlgmr.msrb.gmra.mxu2 %vm64_vm1, %v345_v37  ;;  %vm356_vm5 = vcmp.eq.f32.partialorder %v355_v47, 8.507059e+37 }
 0x4ca   :  { %900 = vpow2.f32 %v664_v36  ;;  %667 = vadd.xlane.f32.xlu0 %v666_v39 }
 0x4cc   :  { %v899_v40 = vpop.eup %898 }
 0x4cd   :  { %v347_v41 = vmul.f32 %v899_v40, %v330_v29  ;;  %vm352_vm15 = vweird.f32 %v899_v40  ;;  %v514_v58 = vpop.xlane.xlu1 %513 }
 0x4ce   :  { %vm353_vm4 = vmor %vm351_vm3, %vm352_vm15  ;;  %v511_v57 = vpop.xlane.xlu0 %510  ;;  %v541_v18 = vand.u32 2147483648, %v514_v58  ;;  %vm535_vm11 = vweird.f32 %v514_v58  ;;  %v539_v23 = vand.u32 2147483647, %v514_v58 }
 0x4cf   :  { %v348_v42 = vsub.f32 1.0, %v347_v41  ;;  %902 = vrcp.f32 %v511_v57  ;;  %v526_v5 = vand.u32 2147483648, %v511_v57  ;;  %vm520_vm7 = vweird.f32 %v511_v57 }
 0x4d0   :  { %v1105_v43 = vpop.eup %900  ;;  %904 = vrcp.f32 %v514_v58  ;;  %v524_v7 = vand.u32 2147483647, %v511_v57  ;;  %v542_v25 = vor.u32 1.1754944e-38, %v541_v18  ;;  %vm540_vm14 = vcmp.eq.f32.partialorder %v539_v23, 8.507059e+37 }
 0x4d1   :  { %v349_v45 = vmul.f32 %v899_v40, %v348_v42  ;;  %v669_v46 = vsel %vm64_vm1, %v1105_v43, 0.0  ;;  %v527_v33 = vor.u32 1.1754944e-38, %v526_v5 }
 0x4d2   :  { %670 = vadd.xlane.f32.xlu1 %v669_v46  ;;  %vm525_vm9 = vcmp.eq.f32.partialorder %v524_v7, 8.507059e+37 }
 0x4d3   :  { %v350_v48 = vadd.f32 %v899_v40, %v349_v45 }
 0x4d5   :  { %v354_v51 = vsel %vm353_vm4, %v899_v40, %v350_v48  ;;  %v903_v59 = vpop.eup %902 }
 0x4d6   :  { %v359_v52 = vsel %vm356_vm5, %v358_v50, %v354_v51  ;;  %v516_v60 = vmul.f32 %v903_v59, %v511_v57  ;;  %v905_v63 = vpop.eup %904  ;;  %vm521_vm6 = vweird.f32 %v903_v59  ;;  %v23_v51 = vld [vmem:[%s1157_s2 + $0x30] sm:$0xff] }
 0x4d7   :  { %v360_v55 = vmul.f32 %v1083_v6, %v359_v52  ;;  %v531_v0 = vmul.f32 %v905_v63, %v514_v58  ;;  %vm522_vm8 = vmor %vm520_vm7, %vm521_vm6  ;;  %vm536_vm10 = vweird.f32 %v905_v63  ;;  %601 = vmatpush.msrb.mxu3 %v23_v51 }
 0x4d8   :  { %v517_v62 = vsub.f32 1.0, %v516_v60  ;;  %vm537_vm12 = vmor %vm535_vm11, %vm536_vm10 }
 0x4d9   :  { %810 = vmatmul.msk.f32.gmra.mxu2 %vm64_vm1, %v360_v55  ;;  %v532_v3 = vsub.f32 1.0, %v531_v0 }
 0x4da   :  { %v518_v1 = vmul.f32 %v903_v59, %v517_v62  ;;  %v877_v62 = vld [vmem:[%s1157_s2 + $0x51] ss:$0 sm:$0xff] }
 0x4db   :  { %v533_v9 = vmul.f32 %v905_v63, %v532_v3 }
 0x4dc   :  { %v519_v4 = vadd.f32 %v903_v59, %v518_v1 }
 0x4dd   :  { %v534_v17 = vadd.f32 %v905_v63, %v533_v9 }
 0x4de   :  { %867 = vrot.lane.b32.xlu0 %v1035_v53, %s943_s12  ;;  %v523_v10 = vsel %vm522_vm8, %v903_v59, %v519_v4 }
 0x4df   :  { %v528_v15 = vsel %vm525_vm9, %v527_v33, %v523_v10  ;;  %v538_v24 = vsel %vm537_vm12, %v905_v63, %v534_v17 }
 0x4e0   :  { %v529_v22 = vmul.f32 %v1089_v11, %v528_v15  ;;  %v543_v30 = vsel %vm540_vm14, %v542_v25, %v538_v24 }
 0x4e1   :  { %v544_v36 = vmul.f32 %v1091_v12, %v543_v30 }
 0x4eb   :  { %872 = vrot.lane.b32.xlu1 %v1035_v53, %s942_s11 }
 0x53d   :  { %v668_v61 = vpop.xlane.xlu0 %667 }
 0x53e   :  { %906 = vrcp.f32 %v668_v61  ;;  %v683_v28 = vand.u32 2147483648, %v668_v61  ;;  %vm677_vm15 = vweird.f32 %v668_v61  ;;  %v681_v29 = vand.u32 2147483647, %v668_v61 }
 0x540   :  { %v684_v34 = vor.u32 1.1754944e-38, %v683_v28  ;;  %vm682_vm4 = vcmp.eq.f32.partialorder %v681_v29, 8.507059e+37 }
 0x544   :  { %v907_v53 = vpop.eup %906 }
 0x545   :  { %v1118_v2 = vpop.xlane.xlu1 %670  ;;  %v673_v6 = vmul.f32 %v907_v53, %v668_v61  ;;  %vm678_vm13 = vweird.f32 %v907_v53 }
 0x546   :  { %908 = vrcp.f32 %v1118_v2  ;;  %vm679_vm3 = vmor %vm677_vm15, %vm678_vm13  ;;  %v698_v42 = vand.u32 2147483648, %v1118_v2  ;;  %vm692_vm6 = vweird.f32 %v1118_v2  ;;  %v696_v12 = vand.u32 2147483647, %v1118_v2 }
 0x547   :  { %v674_v13 = vsub.f32 1.0, %v673_v6 }
 0x548   :  { %v699_v47 = vor.u32 1.1754944e-38, %v698_v42  ;;  %vm697_vm8 = vcmp.eq.f32.partialorder %v696_v12, 8.507059e+37 }
 0x549   :  { %v675_v19 = vmul.f32 %v907_v53, %v674_v13 }
 0x54b   :  { %v676_v26 = vadd.f32 %v907_v53, %v675_v19 }
 0x54c   :  { %v390_v8 = vpop.f32.mrf.mxu2  ;;  %v909_v38 = vpop.eup %908 }
 0x54d   :  { %811 = vmatmul.msk.f32.vlgmr.msra.gmra.mxu3 %vm149_vm2, %v390_v8  ;;  %v688_v20 = vmul.f32 %v909_v38, %v1118_v2  ;;  %v680_v31 = vsel %vm679_vm3, %v907_v53, %v676_v26  ;;  %vm693_vm5 = vweird.f32 %v909_v38 }
 0x54e   :  { %v685_v39 = vsel %vm682_vm4, %v684_v34, %v680_v31  ;;  %vm694_vm7 = vmor %vm692_vm6, %vm693_vm5 }
 0x54f   :  { %v689_v27 = vsub.f32 1.0, %v688_v20  ;;  %v686_v45 = vmul.f32 %v1099_v35, %v685_v39  ;;  %v24_v35 = vld [vmem:[%s1157_s2 + $0x38] sm:$0xff]  ;;  %s945_s2 = smov 128  }
 0x550   :  { %v868_v14 = vpop.permute.xlu0 %867 }
 0x551   :  { %v869_v16 = vunpack.i.l.bf16 %v868_v14  ;;  %v870_v21 = vunpack.i.h.bf16 %v868_v14  ;;  %v690_v32 = vmul.f32 %v909_v38, %v689_v27 }
 0x553   :  { %571 = vmatpush.msra.mxu2 %v869_v16  ;;  %v691_v41 = vadd.f32 %v909_v38, %v690_v32 }
 0x555   :  { %572 = vmatpush.msra.mxu2 %v870_v21  ;;  %v695_v46 = vsel %vm694_vm7, %v909_v38, %v691_v41 }
 0x556   :  { %819 = vmatmul.msk.f32.vlgmr.msra.gmra.mxu2 %vm64_vm1, %v529_v22  ;;  %v700_v48 = vsel %vm697_vm8, %v699_v47, %v695_v46 }
 0x557   :  { %v701_v50 = vmul.f32 %v1105_v43, %v700_v48  ;;  %758 = vmatpush.msrb.mxu2 %v24_v35 }
 0x55c   :  { %v393_v11 = vpop.f32.mrf.mxu2 }
 0x55d   :  { %812 = vmatmul.msk.f32.gmra.mxu3 %vm149_vm2, %v393_v11  ;;  %v873_v37 = vpop.permute.xlu1 %872 }
 0x55e   :  { %v874_v40 = vunpack.i.l.bf16 %v873_v37  ;;  %820 = vmatmul.msk.f32.gmra.mxu2 %vm64_vm1, %v544_v36  ;;  %v875_v44 = vunpack.i.h.bf16 %v873_v37 }
 0x560   :  { %728 = vmatpush.msrb.mxu0 %v874_v40 }
 0x562   :  { %729 = vmatpush.msrb.mxu0 %v875_v44 }
 0x563   :  { %827 = vmatmul.msk.f32.vlgmr.msrb.gmra.mxu0 %vm64_vm1, %v686_v45 }
 0x56b   :  { %828 = vmatmul.msk.f32.gmra.mxu0 %vm64_vm1, %v701_v50 }
 0x5d0   :  { %v419_v57 = vpop.f32.mrf.mxu3 }
 0x5d1   :  { %v449_v60 = vadd.f32 %v1073_v49, %v419_v57 }
 0x5d9   :  { %v574_v52 = vpop.f32.mrf.mxu2 }
 0x5da   :  { %821 = vmatmul.msk.f32.vlgmr.msrb.gmra.mxu3 %vm149_vm2, %v574_v52 }
 0x5e0   :  { %v731_v55 = vpop.f32.mrf.mxu0  ;;  %v422_v58 = vpop.f32.mrf.mxu3 }
 0x5e1   :  { %v577_v56 = vpop.f32.mrf.mxu2  ;;  %829 = vmatmul.msk.f32.vlgmr.msrb.gmra.mxu2 %vm149_vm2, %v731_v55  ;;  %v452_v53 = vadd.f32 %v1075_v54, %v422_v58 }
 0x5e2   :  { %822 = vmatmul.msk.f32.gmra.mxu3 %vm149_vm2, %v577_v56 }
 0x5e8   :  { %v734_v43 = vpop.f32.mrf.mxu0 }
 0x5e9   :  { %830 = vmatmul.msk.f32.gmra.mxu2 %vm149_vm2, %v734_v43 }
 0x65d   :  { %v603_v59 = vpop.f32.mrf.mxu3 }
 0x65e   :  { %v609_v61 = vadd.f32 %v603_v59, %v449_v60 }
 0x664   :  { %v760_v63 = vpop.f32.mrf.mxu2 }
 0x665   :  { %v766_v0 = vadd.f32 %v760_v63, %v609_v61  ;;  %v606_v2 = vpop.f32.mrf.mxu3 }
 0x666   :  { %v610_v4 = vadd.f32 %v606_v2, %v452_v53 }
 0x667   :  { %v769_v1 = vadd.f32 %v877_v62, %v766_v0 }
 0x669   :  { %v771_v3 = vmax.f32 %v769_v1, 0.0 }
 0x66b   :  { %773 = vst.msk [vmem:[#allocation2] sm:$0xff] %vm30_vm0, %v771_v3 }
 0x66c   :  { %v763_v5 = vpop.f32.mrf.mxu2 }
 0x66d   :  { %v767_v6 = vadd.f32 %v763_v5, %v610_v4 }
 0x66f   :  { %v770_v49 = vadd.f32 %v877_v62, %v767_v6 }
 0x671   :  { %v772_v7 = vmax.f32 %v770_v49, 0.0 }
 0x673   :  { %774 = vst.msk [vmem:[#allocation2 + $0x8] sm:$0xff] %vm30_vm0, %v772_v7 }
 0x674   :  { %787 = dma.vmem_to_hbm [thread:$0]  %s780_s24, 256, %s782_s27, [#allocation3], %s945_s2, %s945_s2, %s946_s0  }
 0x675   :  { %934 = dma.done.wait [#allocation3], 256  }
 0x676   :  { %935 = vsyncadd [#allocation3], 4294967040 }
 0x677   :  { %792 = vsyncpa [#allocation3], 1 }

</bundles_post_ra>
